<compile_context>
chip_gen: v6e
topology: v6e:2x2x1
jax: 0.10.0
libtpu: 0.0.40
codegen_flags: <defaults>
</compile_context>

<pallas_src>
from functools import partial

import jax
import jax.numpy as jnp
from jax.experimental import pallas as pl
from jax.experimental.pallas import tpu as pltpu

K_IN = 787      # input features (kept unpadded — full-extent K block)
H = 256         # hidden width
N_OUT = 118     # original output features
N_PAD = 128     # 118 padded up to a multiple of 128 for lane-dense stores


def _round_up(v, m):
    return (v + m - 1) // m * m


def _cdiv(a, b):
    return (a + b - 1) // b


def _mlp_kernel(x_ref, w1_ref, b1_ref, w2_ref, b2_ref, w3_ref, b3_ref, o_ref):
    # Cast x f32 -> bf16 in VMEM (halves nothing on HBM, but matches bf16 W1
    # for the MXU); accumulate in f32.
    x = x_ref[...].astype(jnp.bfloat16)
    # Layer 1: Linear(787->256) + Dropout(0.5)[identity in eval] + ReLU
    h = jnp.dot(x, w1_ref[...], preferred_element_type=jnp.float32)
    h = jnp.maximum(h + b1_ref[...], 0.0).astype(jnp.bfloat16)
    # Layer 2: Linear(256->256) + Dropout(0.3)[identity in eval] + ReLU
    h = jnp.dot(h, w2_ref[...], preferred_element_type=jnp.float32)
    h = jnp.maximum(h + b2_ref[...], 0.0).astype(jnp.bfloat16)
    # Output layer: Linear(256->118), output lanes padded to 128
    out = jnp.dot(h, w3_ref[...], preferred_element_type=jnp.float32)
    o_ref[...] = (out + b3_ref[...]).astype(o_ref.dtype)


def prepare_params(params):
    """One-time prep: cast weights to bf16, pad only the output dim (118->128).

    Biases stay f32 (epilogue math is f32 on all generations). W1 keeps its
    natural (787, 256) shape — no contraction-dim padding needed.
    """
    w1, b1, w2, b2, w3, b3 = params
    w3p = jnp.zeros((H, N_PAD), jnp.bfloat16).at[:, : w3.shape[1]].set(
        w3.astype(jnp.bfloat16))
    b3p = jnp.zeros((1, N_PAD), jnp.float32).at[:, : b3.shape[1]].set(
        b3.astype(jnp.float32))
    return (w1.astype(jnp.bfloat16), b1.astype(jnp.float32),
            w2.astype(jnp.bfloat16), b2.astype(jnp.float32),
            w3p, b3p)


@jax.jit
def net2_forward(x, prepared):
    """x: [B, 787] float32 -> [B, 118] float32."""
    w1, b1, w2, b2, w3, b3 = prepared
    B, K = x.shape

    # Batch tiling:
    #  * B <= 256: one grid step; block batch dim == full array dim (always a
    #    legal BlockSpec, no padding, no partial blocks).
    #  * B  > 256: at least 2 grid steps (v7x megacore), tile capped at 1024
    #    rows (~85% of HBM roofline per measured Pallas tiling data).
    if B <= 256:
        tm = B
    else:
        tm = min(1024, _round_up(_cdiv(B, 2), 256))
    grid = _cdiv(B, tm)

    const = lambda arr: pl.BlockSpec(arr.shape, lambda i: (0, 0))  # resident

    out = pl.pallas_call(
        _mlp_kernel,
        out_shape=jax.ShapeDtypeStruct((B, N_PAD), jnp.float32),
        grid=(grid,),
        in_specs=[
            # Full-extent K block (787 == array dim) — x read directly, f32.
            pl.BlockSpec((tm, K), lambda i: (i, 0)),
            const(w1), const(b1),
            const(w2), const(b2),
            const(w3), const(b3),
        ],
        out_specs=pl.BlockSpec((tm, N_PAD), lambda i: (i, 0)),
        compiler_params=pltpu.CompilerParams(
            dimension_semantics=("parallel",),
            vmem_limit_bytes=16 << 20,
        ),
    )(x, w1, b1, w2, b2, w3, b3)

    # Strip output-lane padding (fused under jit).
    return out[:, :N_OUT]


def init_params(key):
    """Deterministic init mimicking PyTorch Linear default (uniform +-1/sqrt(fan_in))."""
    dims = [(K_IN, H), (H, H), (H, N_OUT)]
    params = []
    for (fan_in, fan_out) in dims:
        key, kw, kb = jax.random.split(key, 3)
        bound = 1.0 / (fan_in ** 0.5)
        w = jax.random.uniform(kw, (fan_in, fan_out), jnp.float32, -bound, bound)
        b = jax.random.uniform(kb, (1, fan_out), jnp.float32, -bound, bound)
        params += [w, b]
    return tuple(params)


def net2_ref(x, params):
    """f32 reference (no bf16) — dropout is identity in eval mode."""
    w1, b1, w2, b2, w3, b3 = params
    h = jnp.maximum(x @ w1 + b1, 0.0)
    h = jnp.maximum(h @ w2 + b2, 0.0)
    return h @ w3 + b3


if __name__ == "__main__":
    key = jax.random.PRNGKey(0)
    key, kx = jax.random.split(key)
    B = 8
    x = jax.random.normal(kx, (B, K_IN), jnp.float32)
    params = init_params(key)
    prepared = prepare_params(params)

    out = jax.block_until_ready(net2_forward(x, prepared))
    assert out.shape == (B, N_OUT), out.shape

    ref = net2_ref(x, params)
    # Tolerance loosened vs pure-f32 because weights/activations feed the MXU
    # in bf16 (accumulation is still f32) — intentional deviation for speed.
    assert jnp.allclose(out, ref, atol=5e-2, rtol=5e-2), "mismatch vs reference"

    # TODO(synk): train-mode stochastic Dropout(0.5)/(0.3) not implemented
    # (eval-mode identity semantics only).
    print("KERNEL_OK")
</pallas_src>

<mosaic_0001>
module attributes {stable_mosaic.version = 11 : i64} {
  func.func @_mlp_kernel(%arg0: i32, %arg1: memref<8x787xf32, #tpu.memory_space<vmem>>, %arg2: memref<787x256xbf16, #tpu.memory_space<vmem>>, %arg3: memref<1x256xf32, #tpu.memory_space<vmem>>, %arg4: memref<256x256xbf16, #tpu.memory_space<vmem>>, %arg5: memref<1x256xf32, #tpu.memory_space<vmem>>, %arg6: memref<256x128xbf16, #tpu.memory_space<vmem>>, %arg7: memref<1x128xf32, #tpu.memory_space<vmem>>, %arg8: memref<8x128xf32, #tpu.memory_space<vmem>>) attributes {dimension_semantics = [#tpu.dimension_semantics<parallel>], iteration_bounds = array<i64: 1>, scalar_prefetch = 0 : i64, scratch_operands = 0 : i64, tpu.core_type = #tpu.core_type<tc>, window_params = [{transform_indices = @transform_0, window_bounds = array<i64: 8, 787>}, {pipeline_mode = #tpu.pipeline_mode<synchronous>, transform_indices = @transform_1, window_bounds = array<i64: 787, 256>}, {pipeline_mode = #tpu.pipeline_mode<synchronous>, transform_indices = @transform_2, window_bounds = array<i64: 1, 256>}, {pipeline_mode = #tpu.pipeline_mode<synchronous>, transform_indices = @transform_3, window_bounds = array<i64: 256, 256>}, {pipeline_mode = #tpu.pipeline_mode<synchronous>, transform_indices = @transform_4, window_bounds = array<i64: 1, 256>}, {pipeline_mode = #tpu.pipeline_mode<synchronous>, transform_indices = @transform_5, window_bounds = array<i64: 256, 128>}, {pipeline_mode = #tpu.pipeline_mode<synchronous>, transform_indices = @transform_6, window_bounds = array<i64: 1, 128>}, {transform_indices = @transform_7, window_bounds = array<i64: 8, 128>}]} {
    %c0 = arith.constant 0 : index
    %c0_0 = arith.constant 0 : index
    %0 = vector.load %arg1[%c0, %c0_0] : memref<8x787xf32, #tpu.memory_space<vmem>>, vector<8x787xf32>
    %1 = arith.truncf %0 : vector<8x787xf32> to vector<8x787xbf16>
    %c0_1 = arith.constant 0 : index
    %c0_2 = arith.constant 0 : index
    %2 = vector.load %arg2[%c0_1, %c0_2] : memref<787x256xbf16, #tpu.memory_space<vmem>>, vector<787x256xbf16>
    %cst = arith.constant dense<0.000000e+00> : vector<8x256xf32>
    %3 = tpu.matmul %1, %2, %cst {dimension_numbers = #tpu.dot_dimension_numbers<[1], [0], [0], [1], [0, 0, 1, 1], [], []>} : vector<8x787xbf16>, vector<787x256xbf16>, vector<8x256xf32> -> vector<8x256xf32>
    %c0_3 = arith.constant 0 : index
    %c0_4 = arith.constant 0 : index
    %4 = vector.load %arg3[%c0_3, %c0_4] : memref<1x256xf32, #tpu.memory_space<vmem>>, vector<1x256xf32>
    %5 = vector.broadcast %4 : vector<1x256xf32> to vector<8x256xf32>
    %6 = arith.addf %3, %5 : vector<8x256xf32>
    %cst_5 = arith.constant 0.000000e+00 : f32
    %7 = vector.broadcast %cst_5 : f32 to vector<8x256xf32>
    %8 = arith.maximumf %6, %7 : vector<8x256xf32>
    %9 = arith.truncf %8 : vector<8x256xf32> to vector<8x256xbf16>
    %c0_6 = arith.constant 0 : index
    %c0_7 = arith.constant 0 : index
    %10 = vector.load %arg4[%c0_6, %c0_7] : memref<256x256xbf16, #tpu.memory_space<vmem>>, vector<256x256xbf16>
    %cst_8 = arith.constant dense<0.000000e+00> : vector<8x256xf32>
    %11 = tpu.matmul %9, %10, %cst_8 {dimension_numbers = #tpu.dot_dimension_numbers<[1], [0], [0], [1], [0, 0, 1, 1], [], []>} : vector<8x256xbf16>, vector<256x256xbf16>, vector<8x256xf32> -> vector<8x256xf32>
    %c0_9 = arith.constant 0 : index
    %c0_10 = arith.constant 0 : index
    %12 = vector.load %arg5[%c0_9, %c0_10] : memref<1x256xf32, #tpu.memory_space<vmem>>, vector<1x256xf32>
    %13 = vector.broadcast %12 : vector<1x256xf32> to vector<8x256xf32>
    %14 = arith.addf %11, %13 : vector<8x256xf32>
    %cst_11 = arith.constant 0.000000e+00 : f32
    %15 = vector.broadcast %cst_11 : f32 to vector<8x256xf32>
    %16 = arith.maximumf %14, %15 : vector<8x256xf32>
    %17 = arith.truncf %16 : vector<8x256xf32> to vector<8x256xbf16>
    %c0_12 = arith.constant 0 : index
    %c0_13 = arith.constant 0 : index
    %18 = vector.load %arg6[%c0_12, %c0_13] : memref<256x128xbf16, #tpu.memory_space<vmem>>, vector<256x128xbf16>
    %cst_14 = arith.constant dense<0.000000e+00> : vector<8x128xf32>
    %19 = tpu.matmul %17, %18, %cst_14 {dimension_numbers = #tpu.dot_dimension_numbers<[1], [0], [0], [1], [0, 0, 1, 1], [], []>} : vector<8x256xbf16>, vector<256x128xbf16>, vector<8x128xf32> -> vector<8x128xf32>
    %c0_15 = arith.constant 0 : index
    %c0_16 = arith.constant 0 : index
    %20 = vector.load %arg7[%c0_15, %c0_16] : memref<1x128xf32, #tpu.memory_space<vmem>>, vector<1x128xf32>
    %21 = vector.broadcast %20 : vector<1x128xf32> to vector<8x128xf32>
    %22 = arith.addf %19, %21 : vector<8x128xf32>
    %c0_17 = arith.constant 0 : index
    %c0_18 = arith.constant 0 : index
    %23 = vector.load %arg8[%c0_17, %c0_18] : memref<8x128xf32, #tpu.memory_space<vmem>>, vector<8x128xf32>
    tpu.vector_store %arg8[%c0_17, %c0_18], %22 {strides = array<i32>} : memref<8x128xf32, #tpu.memory_space<vmem>>, vector<8x128xf32>,
    return
  }
  func.func @transform_0(%arg0: i32) -> (i32, i32) {
    %c0_i32 = arith.constant 0 : i32
    %c0_i32_0 = arith.constant 0 : i32
    return %arg0, %c0_i32 : i32, i32
  }
  func.func @transform_1(%arg0: i32) -> (i32, i32) {
    %c0_i32 = arith.constant 0 : i32
    %c0_i32_0 = arith.constant 0 : i32
    %c0_i32_1 = arith.constant 0 : i32
    return %c0_i32, %c0_i32_0 : i32, i32
  }
  func.func @transform_2(%arg0: i32) -> (i32, i32) {
    %c0_i32 = arith.constant 0 : i32
    %c0_i32_0 = arith.constant 0 : i32
    %c0_i32_1 = arith.constant 0 : i32
    return %c0_i32, %c0_i32_0 : i32, i32
  }
  func.func @transform_3(%arg0: i32) -> (i32, i32) {
    %c0_i32 = arith.constant 0 : i32
    %c0_i32_0 = arith.constant 0 : i32
    %c0_i32_1 = arith.constant 0 : i32
    return %c0_i32, %c0_i32_0 : i32, i32
  }
  func.func @transform_4(%arg0: i32) -> (i32, i32) {
    %c0_i32 = arith.constant 0 : i32
    %c0_i32_0 = arith.constant 0 : i32
    %c0_i32_1 = arith.constant 0 : i32
    return %c0_i32, %c0_i32_0 : i32, i32
  }
  func.func @transform_5(%arg0: i32) -> (i32, i32) {
    %c0_i32 = arith.constant 0 : i32
    %c0_i32_0 = arith.constant 0 : i32
    %c0_i32_1 = arith.constant 0 : i32
    return %c0_i32, %c0_i32_0 : i32, i32
  }
  func.func @transform_6(%arg0: i32) -> (i32, i32) {
    %c0_i32 = arith.constant 0 : i32
    %c0_i32_0 = arith.constant 0 : i32
    %c0_i32_1 = arith.constant 0 : i32
    return %c0_i32, %c0_i32_0 : i32, i32
  }
  func.func @transform_7(%arg0: i32) -> (i32, i32) {
    %c0_i32 = arith.constant 0 : i32
    %c0_i32_0 = arith.constant 0 : i32
    return %arg0, %c0_i32 : i32, i32
  }
}

</mosaic_0001>

<bundles_post_ra>
// kernel: net2_forward.1
= control target key start
LH: loop header
LB: loop body
LE: loop exit
PB: predicated region body
PF: predicated region fallthrough
CT: control target
= control target key end

     0   :  { %12 = vsyncpa [#allocation3], 0  ;;  %s1904_s0 = inlined_call_operand.hbm [shape: f32[8,787], index: 0, kind: input, shape index: {}]   ;;  %s1905_s1 = inlined_call_operand.hbm [shape: bf16[787,256], index: 1, kind: input, shape index: {}]   ;;  %s1906_s2 = inlined_call_operand.vmem [shape: f32[1,256], index: 2, kind: input, shape index: {}]   ;;  %s1907_s3 = inlined_call_operand.hbm [shape: bf16[256,256], index: 3, kind: input, shape index: {}]   ;;  %s1908_s4 = inlined_call_operand.vmem [shape: f32[1,256], index: 4, kind: input, shape index: {}]   ;;  %s1909_s5 = inlined_call_operand.hbm [shape: bf16[256,128], index: 5, kind: input, shape index: {}]   ;;  %s1910_s6 = inlined_call_operand.vmem [shape: f32[1,128], index: 6, kind: input, shape index: {}]   ;;  %s1911_s7 = inlined_call_operand.hbm [shape: f32[8,128], index: 7, kind: output, shape index: {}]  }
   0x1   :  { %13 = vsyncpa [#allocation6], 0 }
   0x2   :  { %14 = vsyncpa [#allocation9], 0 }
   0x3   :  { %15 = vsyncpa [#allocation4], 0  ;;  %s1829_s24 = smov [#allocation5]  }
   0x4   :  { %s31_s25 = sshll.u32 %s1829_s24, 4  ;;  %s32_s25 = int_to_ptr.vmem [resolvable:$true] %s31_s25 }
   0x5   :  { %s1729_s26 = scalar_lea.vmem %s32_s25, 12672  ;;  %p1734_p1 = scmp.lt.s32.totalorder %s32_s25, %s32_s25 }
   0x6   :  { %p1730_p0 = scmp.ne.s32.totalorder %s32_s25, %s1729_s26  ;;  %p1735_p2 = scmp.lt.s32.totalorder %s1729_s26, %s1729_s26 }
   0x8   :  { %p1736_p3 = por %p1735_p2, %p1734_p1 }
   0xa   :  { %p1737_p4 = pnand %p1736_p3, %p1730_p0 }
   0xc   :  { %1740 = shalt.err (!%p1737_p4)
}
   0xd   :  { %s1830_s27 = smov 128   ;;  %s1831_s28 = smov 8  }
   0xe   :  { %37 = dma.hbm_to_vmem [thread:$0]  %s1905_s1, 12672, %s32_s25, [#allocation6], %s1830_s27, %s1830_s27, %s1831_s28  }
   0xf   :  { %s1832_s8 = smov [#allocation2]   ;;  %s1833_s10 = smov [#allocation7]  }
  0x10   :  { %s22_s9 = sshll.u32 %s1832_s8, 4  ;;  %s45_s11 = sshll.u32 %s1833_s10, 4  ;;  %s23_s9 = int_to_ptr.vmem [resolvable:$true] %s22_s9  ;;  %s46_s11 = int_to_ptr.vmem [resolvable:$true] %s45_s11 }
  0x11   :  { %s1749_s12 = scalar_lea.vmem %s23_s9, 896  ;;  %p1754_p6 = scmp.lt.s32.totalorder %s23_s9, %s23_s9 }
  0x12   :  { %p1750_p5 = scmp.ne.s32.totalorder %s23_s9, %s1749_s12  ;;  %p1755_p7 = scmp.lt.s32.totalorder %s1749_s12, %s1749_s12 }
  0x14   :  { %p1756_p8 = por %p1755_p7, %p1754_p6 }
  0x16   :  { %p1757_p9 = pnand %p1756_p8, %p1750_p5 }
  0x18   :  { %1760 = shalt.err (!%p1757_p9)
}
  0x19   :  { %25 = dma.hbm_to_vmem [thread:$0]  %s1904_s0, 896, %s23_s9, [#allocation3]  }
  0x1a   :  { %s1769_s15 = scalar_lea.vmem %s46_s11, 4096  ;;  %p1774_p11 = scmp.lt.s32.totalorder %s46_s11, %s46_s11 }
  0x1b   :  { %p1770_p10 = scmp.ne.s32.totalorder %s46_s11, %s1769_s15  ;;  %p1775_p12 = scmp.lt.s32.totalorder %s1769_s15, %s1769_s15 }
  0x1d   :  { %p1776_p13 = por %p1775_p12, %p1774_p11 }
  0x1f   :  { %p1777_p0 = pnand %p1776_p13, %p1770_p10 }
  0x21   :  { %1780 = shalt.err (!%p1777_p0)
}
  0x22   :  { %51 = dma.hbm_to_vmem [thread:$0]  %s1907_s3, 4096, %s46_s11, [#allocation6], %s1830_s27, %s1830_s27, %s1831_s28  }
  0x23   :  { %s1834_s17 = smov [#allocation8]  }
  0x24   :  { %s59_s18 = sshll.u32 %s1834_s17, 4  ;;  %s60_s18 = int_to_ptr.vmem [resolvable:$true] %s59_s18 }
  0x25   :  { %s1789_s19 = scalar_lea.vmem %s60_s18, 2048  ;;  %p1794_p2 = scmp.lt.s32.totalorder %s60_s18, %s60_s18 }
  0x26   :  { %p1790_p1 = scmp.ne.s32.totalorder %s60_s18, %s1789_s19  ;;  %p1795_p3 = scmp.lt.s32.totalorder %s1789_s19, %s1789_s19 }
  0x28   :  { %p1796_p4 = por %p1795_p3, %p1794_p2 }
  0x2a   :  { %p1797_p5 = pnand %p1796_p4, %p1790_p1 }
  0x2c   :  { %1800 = shalt.err (!%p1797_p5)
}
  0x2d   :  { %s1835_s0 = smov 64   ;;  %s1836_s20 = smov 4  }
  0x2e   :  { %65 = dma.hbm_to_vmem [thread:$0]  %s1909_s5, 2048, %s60_s18, [#allocation9], %s1835_s0, %s1835_s0, %s1836_s20  }
  0x2f   :  { %1821 = dma.done.wait [#allocation3], 896  }
  0x30   :  { %1822 = vsyncadd [#allocation3], 4294966400 }
  0x31   :  { %1823 = dma.done.wait [#allocation6], 16768  }
  0x32   :  { %1824 = vsyncadd [#allocation6], 4294950528 }
  0x33   :  { %1825 = dma.done.wait [#allocation9], 2048  }
  0x34   :  { %1826 = vsyncadd [#allocation9], 4294965248  ;;  %v1508_v0 = vld [vmem:[#allocation5 + $0x74] ss:$8 sps:$4 sm:$0xff]   ;;  %v1510_v1 = vld [vmem:[#allocation5 + $0x70] ss:$8 sps:$4 sm:$0xff]  }
  0x35   :  { %715 = vmatprep.subr.bf16.mxu0 %v1508_v0  ;;  %v1511_v2 = vld [vmem:[#allocation5 + $0x174] ss:$8 sps:$4 sm:$0xff]   ;;  %v1513_v3 = vld [vmem:[#allocation5 + $0x170] ss:$8 sps:$4 sm:$0xff]   ;;  %v1514_v4 = vld [vmem:[#allocation5 + $0x64] ss:$8 sps:$4 sm:$0xff]  }
  0x36   :  { %716 = vmatpush1.bf16.msra.mxu0 %v1510_v1  ;;  %v1516_v5 = vld [vmem:[#allocation5 + $0x60] ss:$8 sps:$4 sm:$0xff]   ;;  %756 = vmatprep.subr.bf16.mxu1 %v1511_v2  ;;  %v1517_v6 = vld [vmem:[#allocation5 + $0x164] ss:$8 sps:$4 sm:$0xff]   ;;  %v1520_v8 = vld [vmem:[#allocation5 + $0x54] ss:$8 sps:$4 sm:$0xff]  }
  0x37   :  { %757 = vmatpush1.bf16.msra.mxu1 %v1513_v3  ;;  %717 = vmatprep.subr.bf16.mxu0 %v1514_v4  ;;  %v1519_v7 = vld [vmem:[#allocation5 + $0x160] ss:$8 sps:$4 sm:$0xff]   ;;  %v1522_v9 = vld [vmem:[#allocation5 + $0x50] ss:$8 sps:$4 sm:$0xff]   ;;  %v1523_v10 = vld [vmem:[#allocation5 + $0x154] ss:$8 sps:$4 sm:$0xff]  }
  0x38   :  { %758 = vmatprep.subr.bf16.mxu1 %v1517_v6  ;;  %v1526_v11 = vld [vmem:[#allocation5 + $0x44] ss:$8 sps:$4 sm:$0xff]   ;;  %v1525_v12 = vld [vmem:[#allocation5 + $0x150] ss:$8 sps:$4 sm:$0xff]   ;;  %v1528_v14 = vld [vmem:[#allocation5 + $0x40] ss:$8 sps:$4 sm:$0xff]  }
  0x39   :  { %v1529_v13 = vld [vmem:[#allocation5 + $0x144] ss:$8 sps:$4 sm:$0xff]   ;;  %v1532_v15 = vld [vmem:[#allocation5 + $0x34] ss:$8 sps:$4 sm:$0xff]   ;;  %v1531_v16 = vld [vmem:[#allocation5 + $0x140] ss:$8 sps:$4 sm:$0xff]  }
  0x3a   :  { %718 = vmatpush1.bf16.msra.mxu0 %v1516_v5  ;;  %v1535_v17 = vld [vmem:[#allocation5 + $0x134] ss:$8 sps:$4 sm:$0xff]   ;;  %v1534_v18 = vld [vmem:[#allocation5 + $0x30] ss:$8 sps:$4 sm:$0xff]   ;;  %v1538_v19 = vld [vmem:[#allocation5 + $0x24] ss:$8 sps:$4 sm:$0xff]  }
  0x3b   :  { %719 = vmatprep.subr.bf16.mxu0 %v1520_v8  ;;  %759 = vmatpush1.bf16.msra.mxu1 %v1519_v7  ;;  %v1537_v20 = vld [vmem:[#allocation5 + $0x130] ss:$8 sps:$4 sm:$0xff]   ;;  %v1541_v21 = vld [vmem:[#allocation5 + $0x124] ss:$8 sps:$4 sm:$0xff]   ;;  %v1540_v22 = vld [vmem:[#allocation5 + $0x20] ss:$8 sps:$4 sm:$0xff]  }
  0x3c   :  { %760 = vmatprep.subr.bf16.mxu1 %v1523_v10  ;;  %v1544_v23 = vld [vmem:[#allocation5 + $0x14] ss:$8 sps:$4 sm:$0xff]   ;;  %v1543_v24 = vld [vmem:[#allocation5 + $0x120] ss:$8 sps:$4 sm:$0xff]   ;;  %v1546_v26 = vld [vmem:[#allocation5 + $0x10] ss:$8 sps:$4 sm:$0xff]  }
  0x3d   :  { %v1547_v25 = vld [vmem:[#allocation5 + $0x114] ss:$8 sps:$4 sm:$0xff]   ;;  %v1550_v27 = vld [vmem:[#allocation5 + $0x4] ss:$8 sps:$4 sm:$0xff]   ;;  %v1549_v28 = vld [vmem:[#allocation5 + $0x110] ss:$8 sps:$4 sm:$0xff]  }
  0x3e   :  { %720 = vmatpush1.bf16.msra.mxu0 %v1522_v9  ;;  %v1553_v29 = vld [vmem:[#allocation5 + $0x104] ss:$8 sps:$4 sm:$0xff]   ;;  %v1552_v30 = vld [vmem:[#allocation5] ss:$8 sps:$4 sm:$0xff]   ;;  %v1556_v31 = vld [vmem:[#allocation5 + $0xf4] ss:$8 sps:$4 sm:$0xff]  }
  0x3f   :  { %721 = vmatprep.subr.bf16.mxu0 %v1526_v11  ;;  %761 = vmatpush1.bf16.msra.mxu1 %v1525_v12  ;;  %v1555_v32 = vld [vmem:[#allocation5 + $0x100] ss:$8 sps:$4 sm:$0xff]   ;;  %v1559_v33 = vld [vmem:[#allocation5 + $0x1f4] ss:$8 sps:$4 sm:$0xff]   ;;  %v1558_v34 = vld [vmem:[#allocation5 + $0xf0] ss:$8 sps:$4 sm:$0xff]  }
  0x40   :  { %762 = vmatprep.subr.bf16.mxu1 %v1529_v13  ;;  %v1562_v35 = vld [vmem:[#allocation5 + $0xe4] ss:$8 sps:$4 sm:$0xff]   ;;  %v1561_v36 = vld [vmem:[#allocation5 + $0x1f0] ss:$8 sps:$4 sm:$0xff]   ;;  %v1564_v38 = vld [vmem:[#allocation5 + $0xe0] ss:$8 sps:$4 sm:$0xff]  }
  0x41   :  { %v1565_v37 = vld [vmem:[#allocation5 + $0x1e4] ss:$8 sps:$4 sm:$0xff]   ;;  %v1568_v39 = vld [vmem:[#allocation5 + $0xd4] ss:$8 sps:$4 sm:$0xff]   ;;  %v1567_v40 = vld [vmem:[#allocation5 + $0x1e0] ss:$8 sps:$4 sm:$0xff]  }
  0x42   :  { %722 = vmatpush1.bf16.msra.mxu0 %v1528_v14  ;;  %v1571_v41 = vld [vmem:[#allocation5 + $0x1d4] ss:$8 sps:$4 sm:$0xff]   ;;  %v1570_v42 = vld [vmem:[#allocation5 + $0xd0] ss:$8 sps:$4 sm:$0xff]   ;;  %v1574_v43 = vld [vmem:[#allocation5 + $0xc4] ss:$8 sps:$4 sm:$0xff]  }
  0x43   :  { %723 = vmatprep.subr.bf16.mxu0 %v1532_v15  ;;  %763 = vmatpush1.bf16.msra.mxu1 %v1531_v16  ;;  %v1573_v44 = vld [vmem:[#allocation5 + $0x1d0] ss:$8 sps:$4 sm:$0xff]   ;;  %v1577_v45 = vld [vmem:[#allocation5 + $0x1c4] ss:$8 sps:$4 sm:$0xff]   ;;  %v1576_v47 = vld [vmem:[#allocation5 + $0xc0] ss:$8 sps:$4 sm:$0xff]  }
  0x44   :  { %764 = vmatprep.subr.bf16.mxu1 %v1535_v17  ;;  %v82_v46 = vld [vmem:[#allocation2 + $0x8] sm:$0xff]  ;;  %v84_v50 = vld [vmem:[#allocation2 + $0x18] sm:$0xff]  ;;  %vm705_vm0 = vcmask 1040384   ;;  %v81_v4 = vld [vmem:[#allocation2] sm:$0xff]  ;;  %vm706_vm1 = vcmask 1041408   ;;  %v1837_v5 = vmov 65535  }
  0x45   :  { %v89_v48 = vpack.c.bf16 %v82_v46, %v82_v46  ;;  %v1580_v49 = vld [vmem:[#allocation5 + $0xb4] ss:$8 sps:$4 sm:$0xff]   ;;  %v1579_v51 = vld [vmem:[#allocation5 + $0x1c0] ss:$8 sps:$4 sm:$0xff]   ;;  %v91_v52 = vpack.c.bf16 %v84_v50, %v84_v50  ;;  %v1582_v54 = vld [vmem:[#allocation5 + $0xb0] ss:$8 sps:$4 sm:$0xff]   ;;  %v88_v9 = vpack.c.bf16 %v81_v4, %v81_v4 }
  0x46   :  { %724 = vmatpush1.bf16.msra.mxu0 %v1534_v18  ;;  %v1583_v53 = vld [vmem:[#allocation5 + $0x1b4] ss:$8 sps:$4 sm:$0xff]   ;;  %v1586_v55 = vld [vmem:[#allocation5 + $0xa4] ss:$8 sps:$4 sm:$0xff]   ;;  %v1585_v56 = vld [vmem:[#allocation5 + $0x1b0] ss:$8 sps:$4 sm:$0xff]  }
  0x47   :  { %725 = vmatprep.subr.bf16.mxu0 %v1538_v19  ;;  %765 = vmatpush1.bf16.msra.mxu1 %v1537_v20  ;;  %v1589_v57 = vld [vmem:[#allocation5 + $0x1a4] ss:$8 sps:$4 sm:$0xff]   ;;  %v1588_v58 = vld [vmem:[#allocation5 + $0xa0] ss:$8 sps:$4 sm:$0xff]   ;;  %v1592_v59 = vld [vmem:[#allocation5 + $0x94] ss:$8 sps:$4 sm:$0xff]  }
  0x48   :  { %766 = vmatprep.subr.bf16.mxu1 %v1541_v21  ;;  %747 = vmatprep.mubr.bf16.mxu0 %v89_v48  ;;  %v1591_v60 = vld [vmem:[#allocation5 + $0x1a0] ss:$8 sps:$4 sm:$0xff]   ;;  %v1595_v61 = vld [vmem:[#allocation5 + $0x194] ss:$8 sps:$4 sm:$0xff]   ;;  %v1594_v62 = vld [vmem:[#allocation5 + $0x90] ss:$8 sps:$4 sm:$0xff]  }
  0x49   :  { %788 = vmatprep.mubr.bf16.mxu1 %v91_v52  ;;  %v1598_v63 = vld [vmem:[#allocation5 + $0x84] ss:$8 sps:$4 sm:$0xff]   ;;  %v1597_v0 = vld [vmem:[#allocation5 + $0x190] ss:$8 sps:$4 sm:$0xff]   ;;  %v1600_v1 = vld [vmem:[#allocation5 + $0x80] ss:$8 sps:$4 sm:$0xff]  }
  0x4a   :  { %726 = vmatpush1.bf16.msra.mxu0 %v1540_v22  ;;  %v1601_v2 = vld [vmem:[#allocation5 + $0x184] ss:$8 sps:$4 sm:$0xff]   ;;  %v1603_v3 = vld [vmem:[#allocation5 + $0x180] ss:$8 sps:$4 sm:$0xff]   ;;  %v707_v6 = vsel %vm705_vm0, 4294967295, %v1837_v5  ;;  %v83_v8 = vld [vmem:[#allocation2 + $0x10] sm:$0xff] }
  0x4b   :  { %727 = vmatprep.subr.bf16.mxu0 %v1544_v23  ;;  %767 = vmatpush1.bf16.msra.mxu1 %v1543_v24  ;;  %v1606_v7 = vld [vmem:[#allocation5 + $0x274] ss:$8 sps:$4 sm:$0xff]   ;;  %v708_v11 = vsel %vm706_vm1, %v707_v6, 0  ;;  %v1604_v12 = vld [vmem:[#allocation5 + $0x270] ss:$8 sps:$4 sm:$0xff]   ;;  %v90_v15 = vpack.c.bf16 %v83_v8, %v83_v8  ;;  %vm701_vm2 = vcmask 154624  }
  0x4c   :  { %768 = vmatprep.subr.bf16.mxu1 %v1547_v25  ;;  %v193_v10 = vld [vmem:[#allocation5 + $0x310] sm:$0x33]  ;;  %v1609_v16 = vld [vmem:[#allocation5 + $0x264] ss:$8 sps:$4 sm:$0xff]   ;;  %v1607_v19 = vld [vmem:[#allocation5 + $0x260] ss:$8 sps:$4 sm:$0xff]  }
  0x4d   :  { %v1423_v13 = vcombine.low %v193_v10, %v193_v10  ;;  %v1424_v14 = vcombine.high %v193_v10, %v193_v10  ;;  %v1653_v20 = vld [vmem:[#allocation5 + $0x304] ss:$8 sps:$4 sm:$0xff]   ;;  %v1612_v21 = vld [vmem:[#allocation5 + $0x254] ss:$8 sps:$4 sm:$0xff]   ;;  %v1651_v22 = vld [vmem:[#allocation5 + $0x300] ss:$8 sps:$4 sm:$0xff]  }
  0x4e   :  { %728 = vmatpush1.bf16.msra.mxu0 %v1546_v26  ;;  %v86_v23 = vld [vmem:[#allocation2 + $0x28] sm:$0xff]  ;;  %v87_v24 = vld [vmem:[#allocation2 + $0x30] sm:$0xff]  ;;  %v1637_v46 = vld [vmem:[#allocation5 + $0x2c0] ss:$8 sps:$4 sm:$0xff]  }
  0x4f   :  { %729 = vmatprep.subr.bf16.mxu0 %v1550_v27  ;;  %769 = vmatpush1.bf16.msra.mxu1 %v1549_v28  ;;  %v710_v17 = vand.u32 %v1423_v13, %v708_v11  ;;  %v713_v18 = vand.u32 %v1424_v14, %v708_v11  ;;  %v93_v25 = vpack.c.bf16 %v86_v23, %v86_v23  ;;  %v1610_v26 = vld [vmem:[#allocation5 + $0x250] ss:$8 sps:$4 sm:$0xff]   ;;  %v1838_v27 = vmov 0   ;;  %v1615_v28 = vld [vmem:[#allocation5 + $0x244] ss:$8 sps:$4 sm:$0xff]  }
  0x50   :  { %770 = vmatprep.subr.bf16.mxu1 %v1553_v29  ;;  %v94_v29 = vpack.c.bf16 %v87_v24, %v87_v24  ;;  %v1640_v48 = vld [vmem:[#allocation5 + $0x2b0] ss:$8 sps:$4 sm:$0xff]   ;;  %v1643_v50 = vld [vmem:[#allocation5 + $0x2a0] ss:$8 sps:$4 sm:$0xff]   ;;  %v1677_v5 = vld [vmem:[#allocation7 + $0x14] ss:$8 sps:$4 sm:$0xff]  }
  0x51   :  { %v1648_v52 = vld [vmem:[#allocation5 + $0x290] ss:$8 sps:$4 sm:$0xff]   ;;  %v1686_v11 = vld [vmem:[#allocation7 + $0xe4] ss:$8 sps:$4 sm:$0xff]   ;;  %v1689_v13 = vld [vmem:[#allocation7 + $0xd4] ss:$8 sps:$4 sm:$0xff]  }
  0x52   :  { %730 = vmatpush1.bf16.msra.mxu0 %v1552_v30  ;;  %v1613_v30 = vld [vmem:[#allocation5 + $0x240] ss:$8 sps:$4 sm:$0xff]   ;;  %v1704_v23 = vld [vmem:[#allocation7 + $0x84] ss:$8 sps:$4 sm:$0xff]  }
  0x53   :  { %731 = vmatprep.subr.bf16.mxu0 %v1556_v31  ;;  %771 = vmatpush1.bf16.msra.mxu1 %v1555_v32  ;;  %v1618_v31 = vld [vmem:[#allocation5 + $0x234] ss:$8 sps:$4 sm:$0xff]   ;;  %v1616_v32 = vld [vmem:[#allocation5 + $0x230] ss:$8 sps:$4 sm:$0xff]  }
  0x54   :  { %772 = vmatprep.subr.bf16.mxu1 %v1559_v33  ;;  %v1621_v33 = vld [vmem:[#allocation5 + $0x224] ss:$8 sps:$4 sm:$0xff]   ;;  %v1672_v4 = vld [vmem:[#allocation7 + $0x20] ss:$8 sps:$4 sm:$0xff]   ;;  %v1675_v6 = vld [vmem:[#allocation7 + $0x10] ss:$8 sps:$4 sm:$0xff]  }
  0x55   :  { %v1678_v8 = vld [vmem:[#allocation7] ss:$8 sps:$4 sm:$0xff]   ;;  %v1681_v10 = vld [vmem:[#allocation7 + $0xf0] ss:$8 sps:$4 sm:$0xff]  }
  0x56   :  { %732 = vmatpush2.bf16.msra.mxu0 %v1558_v34  ;;  %v1619_v34 = vld [vmem:[#allocation5 + $0x220] ss:$8 sps:$4 sm:$0xff]  }
  0x57   :  { %733 = vmatprep.subr.bf16.mxu0 %v1562_v35  ;;  %773 = vmatpush2.bf16.msra.mxu1 %v1561_v36  ;;  %v1624_v35 = vld [vmem:[#allocation5 + $0x214] ss:$8 sps:$4 sm:$0xff]   ;;  %v1622_v36 = vld [vmem:[#allocation5 + $0x210] ss:$8 sps:$4 sm:$0xff]  }
  0x58   :  { %774 = vmatprep.subr.bf16.mxu1 %v1565_v37  ;;  %v1627_v37 = vld [vmem:[#allocation5 + $0x204] ss:$8 sps:$4 sm:$0xff]   ;;  %v1687_v14 = vld [vmem:[#allocation7 + $0xd0] ss:$8 sps:$4 sm:$0xff]   ;;  %v1702_v24 = vld [vmem:[#allocation7 + $0x80] ss:$8 sps:$4 sm:$0xff]  }
  0x5a   :  { %734 = vmatpush2.bf16.msra.mxu0 %v1564_v38  ;;  %v1625_v38 = vld [vmem:[#allocation5 + $0x200] ss:$8 sps:$4 sm:$0xff]  }
  0x5b   :  { %735 = vmatprep.subr.bf16.mxu0 %v1568_v39  ;;  %775 = vmatpush2.bf16.msra.mxu1 %v1567_v40  ;;  %v1630_v39 = vld [vmem:[#allocation5 + $0x2f4] ss:$8 sps:$4 sm:$0xff]   ;;  %v1628_v40 = vld [vmem:[#allocation5 + $0x2f0] ss:$8 sps:$4 sm:$0xff]  }
  0x5c   :  { %776 = vmatprep.subr.bf16.mxu1 %v1571_v41  ;;  %v1633_v41 = vld [vmem:[#allocation5 + $0x2e4] ss:$8 sps:$4 sm:$0xff]  }
  0x5e   :  { %736 = vmatpush2.bf16.msra.mxu0 %v1570_v42  ;;  %v1631_v42 = vld [vmem:[#allocation5 + $0x2e0] ss:$8 sps:$4 sm:$0xff]  }
  0x5f   :  { %737 = vmatprep.subr.bf16.mxu0 %v1574_v43  ;;  %777 = vmatpush2.bf16.msra.mxu1 %v1573_v44  ;;  %v1636_v43 = vld [vmem:[#allocation5 + $0x2d4] ss:$8 sps:$4 sm:$0xff]   ;;  %v1634_v44 = vld [vmem:[#allocation5 + $0x2d0] ss:$8 sps:$4 sm:$0xff]  }
  0x60   :  { %778 = vmatprep.subr.bf16.mxu1 %v1577_v45  ;;  %v1639_v45 = vld [vmem:[#allocation5 + $0x2c4] ss:$8 sps:$4 sm:$0xff]  }
  0x62   :  { %738 = vmatpush2.bf16.msra.mxu0 %v1576_v47  ;;  %v1642_v47 = vld [vmem:[#allocation5 + $0x2b4] ss:$8 sps:$4 sm:$0xff]  }
  0x63   :  { %739 = vmatprep.subr.bf16.mxu0 %v1580_v49  ;;  %779 = vmatpush2.bf16.msra.mxu1 %v1579_v51  ;;  %v1645_v49 = vld [vmem:[#allocation5 + $0x2a4] ss:$8 sps:$4 sm:$0xff]   ;;  %v1650_v51 = vld [vmem:[#allocation5 + $0x294] ss:$8 sps:$4 sm:$0xff]  }
  0x64   :  { %780 = vmatprep.subr.bf16.mxu1 %v1583_v53  ;;  %v1656_v53 = vld [vmem:[#allocation5 + $0x284] ss:$8 sps:$4 sm:$0xff]  }
  0x66   :  { %740 = vmatpush2.bf16.msra.mxu0 %v1582_v54  ;;  %v1654_v54 = vld [vmem:[#allocation5 + $0x280] ss:$8 sps:$4 sm:$0xff]  }
  0x67   :  { %741 = vmatprep.subr.bf16.mxu0 %v1586_v55  ;;  %781 = vmatpush2.bf16.msra.mxu1 %v1585_v56  ;;  %v85_v55 = vld [vmem:[#allocation2 + $0x20] sm:$0xff] }
  0x68   :  { %782 = vmatprep.subr.bf16.mxu1 %v1589_v57  ;;  %v92_v56 = vpack.c.bf16 %v85_v55, %v85_v55  ;;  %v1657_v57 = vld [vmem:[#allocation7 + $0x70] ss:$8 sps:$4 sm:$0xff]  }
  0x6a   :  { %742 = vmatpush2.bf16.msra.mxu0 %v1588_v58  ;;  %v1659_v58 = vld [vmem:[#allocation7 + $0x74] ss:$8 sps:$4 sm:$0xff]  }
  0x6b   :  { %743 = vmatprep.subr.bf16.mxu0 %v1592_v59  ;;  %783 = vmatpush2.bf16.msra.mxu1 %v1591_v60  ;;  %v1662_v59 = vld [vmem:[#allocation7 + $0x64] ss:$8 sps:$4 sm:$0xff]   ;;  %v1660_v60 = vld [vmem:[#allocation7 + $0x60] ss:$8 sps:$4 sm:$0xff]  }
  0x6c   :  { %784 = vmatprep.subr.bf16.mxu1 %v1595_v61  ;;  %v1665_v61 = vld [vmem:[#allocation7 + $0x54] ss:$8 sps:$4 sm:$0xff]  }
  0x6e   :  { %744 = vmatpush2.bf16.msra.mxu0 %v1594_v62  ;;  %v1663_v62 = vld [vmem:[#allocation7 + $0x50] ss:$8 sps:$4 sm:$0xff]  }
  0x6f   :  { %745 = vmatprep.subr.bf16.mxu0 %v1598_v63  ;;  %785 = vmatpush2.bf16.msra.mxu1 %v1597_v0  ;;  %v1668_v63 = vld [vmem:[#allocation7 + $0x44] ss:$8 sps:$4 sm:$0xff]   ;;  %v1666_v0 = vld [vmem:[#allocation7 + $0x40] ss:$8 sps:$4 sm:$0xff]  }
  0x70   :  { %786 = vmatprep.subr.bf16.mxu1 %v1601_v2  ;;  %v1669_v2 = vld [vmem:[#allocation7 + $0x30] ss:$8 sps:$4 sm:$0xff]  }
  0x72   :  { %746 = vmatpush2.bf16.msra.mxu0 %v1600_v1  ;;  %v1671_v1 = vld [vmem:[#allocation7 + $0x34] ss:$8 sps:$4 sm:$0xff]  }
  0x73   :  { %797 = vmatprep.subr.bf16.mxu0 %v1606_v7  ;;  %787 = vmatpush2.bf16.msra.mxu1 %v1603_v3  ;;  %v1674_v3 = vld [vmem:[#allocation7 + $0x24] ss:$8 sps:$4 sm:$0xff]  }
  0x74   :  { %850 = vmatprep.subr.bf16.mxu1 %v713_v18  ;;  %v1680_v7 = vld [vmem:[#allocation7 + $0x4] ss:$8 sps:$4 sm:$0xff]   ;;  %v1693_v18 = vld [vmem:[#allocation7 + $0xb0] ss:$8 sps:$4 sm:$0xff]  }
  0x75   :  { %748 = vmatmul.mubr.bf16.vlgmr.msra.gmra.mxu0 %v88_v9  ;;  %v1683_v9 = vld [vmem:[#allocation7 + $0xf4] ss:$8 sps:$4 sm:$0xff]  }
  0x76   :  { %798 = vmatpush1.bf16.msra.mxu0 %v1604_v12  ;;  %789 = vmatmul.mubr.bf16.vlgmr.msra.gmra.mxu1 %v90_v15  ;;  %v1684_v12 = vld [vmem:[#allocation7 + $0xe0] ss:$8 sps:$4 sm:$0xff]   ;;  %v1692_v15 = vld [vmem:[#allocation7 + $0xc4] ss:$8 sps:$4 sm:$0xff]  }
  0x77   :  { %799 = vmatprep.subr.bf16.mxu0 %v1609_v16  ;;  %851 = vmatpush1.bf16.msra.mxu1 %v710_v17  ;;  %v1690_v16 = vld [vmem:[#allocation7 + $0xc0] ss:$8 sps:$4 sm:$0xff]   ;;  %v1695_v17 = vld [vmem:[#allocation7 + $0xb4] ss:$8 sps:$4 sm:$0xff]  }
  0x78   :  { %870 = vmatprep.mubr.bf16.mxu1 %v1838_v27  ;;  %852 = vmatprep.subr.bf16.mxu1 %v1653_v20  ;;  %v1696_v20 = vld [vmem:[#allocation7 + $0xa0] ss:$8 sps:$4 sm:$0xff]   ;;  %v1707_v27 = vld [vmem:[#allocation8 + $0x70] sm:$0xff]  }
  0x79   :  { %829 = vmatprep.mubr.bf16.mxu0 %v93_v25  ;;  %v1705_v25 = vld [vmem:[#allocation8 + $0x78] sm:$0xff]  }
  0x7a   :  { %800 = vmatpush1.bf16.msra.mxu0 %v1607_v19  ;;  %v1698_v19 = vld [vmem:[#allocation7 + $0xa4] ss:$8 sps:$4 sm:$0xff]  }
  0x7b   :  { %801 = vmatprep.subr.bf16.mxu0 %v1612_v21  ;;  %853 = vmatpush1.bf16.msra.mxu1 %v1651_v22  ;;  %v1701_v21 = vld [vmem:[#allocation7 + $0x94] ss:$8 sps:$4 sm:$0xff]   ;;  %v1699_v22 = vld [vmem:[#allocation7 + $0x90] ss:$8 sps:$4 sm:$0xff]  }
  0x7c   :  { %1087 = vmatprep.subr.bf16.mxu1 %v1659_v58 }
  0x7e   :  { %802 = vmatpush1.bf16.msra.mxu0 %v1610_v26  ;;  %1425 = vmatmul.mubr.msk.bf16.vlgmr.msra.gmra.mxu1 %vm701_vm2, %v94_v29  ;;  %v1706_v26 = vld [vmem:[#allocation8 + $0x38] sm:$0xff]   ;;  %v1709_v29 = vld [vmem:[#allocation8 + $0x68] sm:$0xff]  }
  0x7f   :  { %803 = vmatprep.subr.bf16.mxu0 %v1615_v28  ;;  %1088 = vmatpush1.bf16.msra.mxu1 %v1657_v57  ;;  %v1708_v28 = vld [vmem:[#allocation8 + $0x30] sm:$0xff]  }
  0x80   :  { %1089 = vmatprep.subr.bf16.mxu1 %v1662_v59 }
  0x82   :  { %804 = vmatpush1.bf16.msra.mxu0 %v1613_v30  ;;  %v1710_v30 = vld [vmem:[#allocation8 + $0x28] sm:$0xff]  }
  0x83   :  { %805 = vmatprep.subr.bf16.mxu0 %v1618_v31  ;;  %1090 = vmatpush1.bf16.msra.mxu1 %v1660_v60  ;;  %v1711_v31 = vld [vmem:[#allocation8 + $0x60] sm:$0xff]  }
  0x84   :  { %1091 = vmatprep.subr.bf16.mxu1 %v1665_v61 }
  0x86   :  { %806 = vmatpush1.bf16.msra.mxu0 %v1616_v32  ;;  %v1712_v32 = vld [vmem:[#allocation8 + $0x20] sm:$0xff]  }
  0x87   :  { %807 = vmatprep.subr.bf16.mxu0 %v1621_v33  ;;  %1092 = vmatpush1.bf16.msra.mxu1 %v1663_v62  ;;  %v1713_v33 = vld [vmem:[#allocation8 + $0x58] sm:$0xff]  }
  0x88   :  { %1093 = vmatprep.subr.bf16.mxu1 %v1668_v63 }
  0x8a   :  { %808 = vmatpush1.bf16.msra.mxu0 %v1619_v34  ;;  %v1714_v34 = vld [vmem:[#allocation8 + $0x18] sm:$0xff]  }
  0x8b   :  { %809 = vmatprep.subr.bf16.mxu0 %v1624_v35  ;;  %1094 = vmatpush1.bf16.msra.mxu1 %v1666_v0  ;;  %v1715_v35 = vld [vmem:[#allocation8 + $0x50] sm:$0xff]  }
  0x8c   :  { %1095 = vmatprep.subr.bf16.mxu1 %v1671_v1 }
  0x8e   :  { %810 = vmatpush1.bf16.msra.mxu0 %v1622_v36  ;;  %v1716_v36 = vld [vmem:[#allocation8 + $0x10] sm:$0xff]  }
  0x8f   :  { %811 = vmatprep.subr.bf16.mxu0 %v1627_v37  ;;  %1096 = vmatpush1.bf16.msra.mxu1 %v1669_v2 }
  0x90   :  { %1097 = vmatprep.subr.bf16.mxu1 %v1674_v3 }
  0x92   :  { %812 = vmatpush1.bf16.msra.mxu0 %v1625_v38 }
  0x93   :  { %813 = vmatprep.subr.bf16.mxu0 %v1630_v39  ;;  %1098 = vmatpush1.bf16.msra.mxu1 %v1672_v4 }
  0x94   :  { %1099 = vmatprep.subr.bf16.mxu1 %v1677_v5 }
  0x96   :  { %814 = vmatpush2.bf16.msra.mxu0 %v1628_v40 }
  0x97   :  { %815 = vmatprep.subr.bf16.mxu0 %v1633_v41  ;;  %1100 = vmatpush1.bf16.msra.mxu1 %v1675_v6 }
  0x98   :  { %1101 = vmatprep.subr.bf16.mxu1 %v1680_v7 }
  0x9a   :  { %816 = vmatpush2.bf16.msra.mxu0 %v1631_v42 }
  0x9b   :  { %817 = vmatprep.subr.bf16.mxu0 %v1636_v43  ;;  %1102 = vmatpush1.bf16.msra.mxu1 %v1678_v8  ;;  %v1717_v8 = vld [vmem:[#allocation8 + $0x48] sm:$0xff]  }
  0x9c   :  { %1103 = vmatprep.subr.bf16.mxu1 %v1683_v9  ;;  %v1718_v9 = vld [vmem:[#allocation8 + $0x8] sm:$0xff]  }
  0x9e   :  { %818 = vmatpush2.bf16.msra.mxu0 %v1634_v44 }
  0x9f   :  { %819 = vmatprep.subr.bf16.mxu0 %v1639_v45  ;;  %1104 = vmatpush2.bf16.msra.mxu1 %v1681_v10  ;;  %v1719_v10 = vld [vmem:[#allocation8 + $0x40] sm:$0xff]  }
  0xa0   :  { %1105 = vmatprep.subr.bf16.mxu1 %v1686_v11  ;;  %v1720_v11 = vld [vmem:[#allocation8] sm:$0xff]  }
  0xa2   :  { %820 = vmatpush2.bf16.msra.mxu0 %v1637_v46 }
  0xa3   :  { %821 = vmatprep.subr.bf16.mxu0 %v1642_v47  ;;  %1106 = vmatpush2.bf16.msra.mxu1 %v1684_v12  ;;  %v915_v12 = vld [vmem:[%s1908_s4] sm:$0x3]  ;;  %s1839_s4 = smov [#allocation10]  }
  0xa4   :  { %1107 = vmatprep.subr.bf16.mxu1 %v1689_v13  ;;  %s1314_s26 = sshll.u32 %s1839_s4, 4  ;;  %s1315_s26 = int_to_ptr.vmem [resolvable:$true] %s1314_s26 }
  0xa5   :  { %s1801_s27 = scalar_lea.vmem %s1315_s26, 128  ;;  %p1806_p7 = scmp.lt.s32.totalorder %s1315_s26, %s1315_s26 }
  0xa6   :  { %822 = vmatpush2.bf16.msra.mxu0 %v1640_v48  ;;  %p1802_p6 = scmp.ne.s32.totalorder %s1315_s26, %s1801_s27  ;;  %p1807_p8 = scmp.lt.s32.totalorder %s1801_s27, %s1801_s27 }
  0xa7   :  { %823 = vmatprep.subr.bf16.mxu0 %v1645_v49  ;;  %1108 = vmatpush2.bf16.msra.mxu1 %v1687_v14  ;;  %v196_v49 = vlaneseq }
  0xa8   :  { %1109 = vmatprep.subr.bf16.mxu1 %v1692_v15  ;;  %p1808_p9 = por %p1807_p8, %p1806_p7 }
  0xaa   :  { %824 = vmatpush2.bf16.msra.mxu0 %v1643_v50  ;;  %v197_v50 = vshrl.u32 %v196_v49, 7  ;;  %p1809_p10 = pnand %p1808_p9, %p1802_p6 }
  0xab   :  { %825 = vmatprep.subr.bf16.mxu0 %v1650_v51  ;;  %1110 = vmatpush2.bf16.msra.mxu1 %v1690_v16 }
  0xac   :  { %1111 = vmatprep.subr.bf16.mxu1 %v1695_v17  ;;  %v198_v51 = vsub.s32 0, %v197_v50 }
  0xae   :  { %826 = vmatpush2.bf16.msra.mxu0 %v1648_v52  ;;  %v194_v52 = vld [vmem:[%s1906_s2] sm:$0x3]  ;;  %v920_v13 = vrot.slane %v915_v12, %v198_v51 }
  0xaf   :  { %827 = vmatprep.subr.bf16.mxu0 %v1656_v53  ;;  %1112 = vmatpush2.bf16.msra.mxu1 %v1693_v18  ;;  %v202_v53 = vsub.s32 1, %v197_v50 }
  0xb0   :  { %1113 = vmatprep.subr.bf16.mxu1 %v1698_v19 }
  0xb1   :  { %v203_v55 = vrot.slane %v194_v52, %v202_v53  ;;  %v924_v14 = vrot.slane %v915_v12, %v202_v53 }
  0xb2   :  { %828 = vmatpush2.bf16.msra.mxu0 %v1654_v54  ;;  %v199_v54 = vrot.slane %v194_v52, %v198_v51 }
  0xb3   :  { %1114 = vmatpush2.bf16.msra.mxu1 %v1696_v20  ;;  %1475 = vmatprep.subr.bf16.mxu0 %v1705_v25 }
  0xb4   :  { %1115 = vmatprep.subr.bf16.mxu1 %v1701_v21 }
  0xb5   :  { %830 = vmatmul.mubr.bf16.vlgmr.msra.gmra.mxu0 %v92_v56 }
  0xb6   :  { %1476 = vmatpush3.bf16.msra.mxu0 %v1706_v26  ;;  %v1458_v26 = vld [vmem:[%s1910_s6] ss:$0 sm:$0xff] }
  0xb7   :  { %1116 = vmatpush2.bf16.msra.mxu1 %v1699_v22  ;;  %1477 = vmatprep.subr.bf16.mxu0 %v1707_v27 }
  0xb8   :  { %1117 = vmatprep.subr.bf16.mxu1 %v1704_v23 }
  0xba   :  { %1478 = vmatpush3.bf16.msra.mxu0 %v1708_v28 }
  0xbb   :  { %1118 = vmatpush2.bf16.msra.mxu1 %v1702_v24  ;;  %1479 = vmatprep.subr.bf16.mxu0 %v1709_v29 }
  0xbe   :  { %1480 = vmatpush3.bf16.msra.mxu0 %v1710_v30 }
  0xbf   :  { %1481 = vmatprep.subr.bf16.mxu0 %v1711_v31 }
  0xc2   :  { %1482 = vmatpush3.bf16.msra.mxu0 %v1712_v32 }
  0xc3   :  { %1483 = vmatprep.subr.bf16.mxu0 %v1713_v33 }
  0xc6   :  { %1484 = vmatpush3.bf16.msra.mxu0 %v1714_v34 }
  0xc7   :  { %1485 = vmatprep.subr.bf16.mxu0 %v1715_v35 }
  0xca   :  { %1486 = vmatpush3.bf16.msra.mxu0 %v1716_v36 }
  0xcb   :  { %1487 = vmatprep.subr.bf16.mxu0 %v1717_v8 }
  0xce   :  { %1488 = vmatpush3.bf16.msra.mxu0 %v1718_v9 }
  0xcf   :  { %1489 = vmatprep.subr.bf16.mxu0 %v1719_v10 }
  0xd2   :  { %1490 = vmatpush3.bf16.msra.mxu0 %v1720_v11 }
 0x135   :  { %v749_v37 = vpop.f32.mrf.mxu0 }
 0x136   :  { %v790_v39 = vpop.f32.mrf.mxu1  ;;  %v750_v56 = vadd.f32 %v749_v37, %v199_v54 }
 0x137   :  { %v751_v38 = vpop.f32.mrf.mxu0 }
 0x138   :  { %v792_v41 = vpop.f32.mrf.mxu1  ;;  %v752_v57 = vadd.f32 %v751_v38, %v203_v55  ;;  %v791_v58 = vadd.f32 %v790_v39, %v750_v56 }
 0x139   :  { %v753_v40 = vpop.f32.mrf.mxu0 }
 0x13a   :  { %v794_v43 = vpop.f32.mrf.mxu1  ;;  %v793_v60 = vadd.f32 %v792_v41, %v752_v57 }
 0x13b   :  { %v754_v42 = vpop.f32.mrf.mxu0 }
 0x13c   :  { %v795_v44 = vpop.f32.mrf.mxu1 }
 0x13e   :  { %v872_v45 = vpop.f32.mrf.mxu1 }
 0x140   :  { %v874_v46 = vpop.f32.mrf.mxu1 }
 0x142   :  { %v876_v47 = vpop.f32.mrf.mxu1 }
 0x144   :  { %v877_v48 = vpop.f32.mrf.mxu1 }
 0x175   :  { %v831_v59 = vpop.f32.mrf.mxu0 }
 0x176   :  { %v832_v61 = vadd.f32 %v831_v59, %v791_v58 }
 0x177   :  { %v833_v62 = vpop.f32.mrf.mxu0 }
 0x178   :  { %v873_v63 = vadd.f32 %v872_v45, %v832_v61  ;;  %v834_v0 = vadd.f32 %v833_v62, %v793_v60 }
 0x179   :  { %v835_v1 = vpop.f32.mrf.mxu0 }
 0x17a   :  { %v875_v2 = vadd.f32 %v874_v46, %v834_v0  ;;  %v879_v3 = vmax.f32 %v873_v63, 0.0 }
 0x17b   :  { %v836_v4 = vpop.f32.mrf.mxu0 }
 0x17c   :  { %v880_v5 = vmax.f32 %v875_v2, 0.0  ;;  %v881_v7 = vpack.c.bf16 %v879_v3, %v879_v3 }
 0x17e   :  { %v882_v6 = vpack.c.bf16 %v880_v5, %v880_v5 }
 0x180   :  { %1119 = vmatprep.mubr.bf16.mxu1 %v882_v6 }
 0x181   :  { %1120 = vmatmul.mubr.bf16.vlgmr.msra.gmra.mxu1 %v881_v7 }
 0x241   :  { %v1121_v15 = vpop.f32.mrf.mxu1 }
 0x242   :  { %v1122_v16 = vadd.f32 %v1121_v15, %v920_v13 }
 0x243   :  { %v1123_v17 = vpop.f32.mrf.mxu1 }
 0x244   :  { %v1124_v18 = vadd.f32 %v1123_v17, %v924_v14  ;;  %v1128_v19 = vmax.f32 %v1122_v16, 0.0 }
 0x245   :  { %v1125_v20 = vpop.f32.mrf.mxu1 }
 0x246   :  { %v1129_v21 = vmax.f32 %v1124_v18, 0.0  ;;  %v1130_v24 = vpack.c.bf16 %v1128_v19, %v1128_v19 }
 0x247   :  { %v1126_v22 = vpop.f32.mrf.mxu1 }
 0x248   :  { %v1131_v23 = vpack.c.bf16 %v1129_v21, %v1129_v21 }
 0x24a   :  { %1299 = vmatprep.mubr.bf16.mxu0 %v1131_v23 }
 0x24b   :  { %1300 = vmatmul.mubr.bf16.vlgmr.msra.gmra.mxu0 %v1130_v24 }
 0x30b   :  { %v1491_v25 = vpop.f32.mrf.mxu0 }
 0x30d   :  { %v1492_v27 = vpop.f32.mrf.mxu0 }
 0x30e   :  { %v1493_v28 = vadd.f32 %v1492_v27, %v1491_v25 }
 0x30f   :  { %v1494_v29 = vpop.f32.mrf.mxu0 }
 0x310   :  { %v1302_v30 = vadd.f32 %v1493_v28, %v1458_v26 }
 0x311   :  { %v1495_v31 = vpop.f32.mrf.mxu0 }
 0x312   :  { %1307 = vst [vmem:[#allocation10] sm:$0xff] %v1302_v30 }
 0x313   :  { %1812 = shalt.err (!%p1809_p10)
}
 0x314   :  { %1317 = dma.vmem_to_hbm [thread:$0]  %s1315_s26, 128, %s1911_s7, [#allocation4]  }
 0x315   :  { %1827 = dma.done.wait [#allocation4], 128  }
 0x316   :  { %1828 = vsyncadd [#allocation4], 4294967168 }
 0x317   :  { %1321 = vsyncpa [#allocation3], 1 }
 0x318   :  { %1322 = vsyncpa [#allocation6], 1 }
 0x319   :  { %1323 = vsyncpa [#allocation9], 1 }
 0x31a   :  { %1324 = vsyncpa [#allocation4], 1 }

</bundles_post_ra>
